<compile_context>
chip_gen: v7x
topology: tpu7x:2x2x1
jax: 0.10.0
libtpu: 0.0.40
codegen_flags: <defaults>
</compile_context>

<pallas_src>
import functools
from typing import NamedTuple

import jax
import jax.numpy as jnp
from jax.experimental import pallas as pl
from jax.experimental.pallas import tpu as pltpu


LN_EPS = 1e-5  # PyTorch nn.LayerNorm default


def _round_up(x: int, m: int) -> int:
    return (x + m - 1) // m * m


def _cdiv(a: int, b: int) -> int:
    return (a + b - 1) // b


def _tpu_generation() -> int:
    """Best-effort TPU generation (5/6/7); 0 if unknown."""
    try:
        kind = jax.devices()[0].device_kind.lower()
    except Exception:
        return 0
    for g in (7, 6, 5, 4, 3, 2):
        if (f"v{g}" in kind) or (f"tpu{g}" in kind):
            return g
    return 0


def _vmem_capacity_bytes(gen: int) -> int:
    try:
        return int(pltpu.get_tpu_info().vmem_capacity_bytes)
    except Exception:
        # v7x has 64 MiB per TensorCore; v5e/v6e have 128 MiB.
        return (64 << 20) if gen >= 7 else (128 << 20)


# ----------------------------------------------------------------------------
# Kernel
# ----------------------------------------------------------------------------
def ffn_kernel(x_ref, gamma_ref, beta_ref, w1_ref, b1_ref, w2_ref, b2_ref,
               o_ref, y_scr, acc_scr, *, d_real: int, act_dtype):
    """Grid = (row_tiles, H_chunks).  H axis is a reduction ("arbitrary")."""
    k = pl.program_id(1)

    # --- H-chunk 0: LayerNorm of the row tile (f32) + accumulator init ------
    @pl.when(k == 0)
    def _():
        x = x_ref[...].astype(jnp.float32)                 # (tile_r, D_pad)
        tile_r, d_pad = x.shape
        inv_d = 1.0 / float(d_real)
        # Padded lanes of x are zero, so plain sums already exclude them; only
        # the centered squares need masking when D was padded.
        mean = jnp.sum(x, axis=-1, keepdims=True) * inv_d
        xc = x - mean
        if d_pad != d_real:
            lane = jax.lax.broadcasted_iota(jnp.int32, (tile_r, d_pad), 1)
            xc = jnp.where(lane < d_real, xc, 0.0)
        var = jnp.sum(xc * xc, axis=-1, keepdims=True) * inv_d
        xn = xc * jax.lax.rsqrt(var + LN_EPS)
        # gamma/beta are zero-padded, so padded lanes of y are exactly 0.
        y = xn * gamma_ref[...] + beta_ref[...]
        y_scr[...] = y.astype(y_scr.dtype)                 # bf16 MXU LHS, reused
        acc_scr[...] = jnp.zeros_like(acc_scr)

    # --- Linear 1 (chunk of H): D -> tile_h, bf16 operands, f32 accumulation
    h = jnp.dot(y_scr[...], w1_ref[...], preferred_element_type=jnp.float32)
    h = (h + b1_ref[...]).astype(act_dtype)
    # Swish (x * sigmoid(x)); bf16 on v6e/v7x (native VPU/EUP), f32 on v5e.
    h = h * jax.nn.sigmoid(h)
    # (Dropout after Swish: identity in eval mode.)

    # --- Linear 2 (chunk of H): tile_h -> D, accumulate into VMEM scratch ---
    acc_scr[...] += jnp.dot(h.astype(w2_ref.dtype), w2_ref[...],
                            preferred_element_type=jnp.float32)

    # --- Last H-chunk: add bias and write the output tile -------------------
    @pl.when(k == pl.num_programs(1) - 1)
    def _():
        # (Dropout after Linear 2: identity in eval mode.)
        o_ref[...] = (acc_scr[...] + b2_ref[...]).astype(o_ref.dtype)


# ----------------------------------------------------------------------------
# Parameter preparation ("module init") — done ONCE, not per call.
# ----------------------------------------------------------------------------
class FFNParams(NamedTuple):
    gamma: jax.Array   # (1, D_pad) f32
    beta: jax.Array    # (1, D_pad) f32
    w1: jax.Array      # (D_pad, H_pad) param_dtype
    b1: jax.Array      # (1, H_pad) f32
    w2: jax.Array      # (H_pad, D_pad) param_dtype
    b2: jax.Array      # (1, D_pad) f32
    d: int
    h: int
    d_pad: int
    h_pad: int
    tile_h: int


def prepare_ffn_params(gamma, beta, w1, b1, w2, b2, *,
                       tile_h_target: int = 512,
                       param_dtype=jnp.bfloat16) -> FFNParams:
    """Pad feature dims to lane-dense multiples of 128 and cast weights to
    bf16 once, so per-call weight traffic is only the kernel's own DMA."""
    D, H = w1.shape
    assert w2.shape == (H, D)
    D_pad = _round_up(D, 128)
    # Balanced H chunking: all chunks equal size, 128-aligned, >= H.
    H_128 = _round_up(H, 128)
    n_h = max(1, _cdiv(H_128, tile_h_target))
    tile_h = _round_up(_cdiv(H_128, n_h), 128)
    H_pad = n_h * tile_h

    f32 = jnp.float32
    gamma_p = jnp.pad(gamma.astype(f32), (0, D_pad - D)).reshape(1, D_pad)
    beta_p = jnp.pad(beta.astype(f32), (0, D_pad - D)).reshape(1, D_pad)
    w1_p = jnp.pad(w1.astype(param_dtype), ((0, D_pad - D), (0, H_pad - H)))
    b1_p = jnp.pad(b1.astype(f32), (0, H_pad - H)).reshape(1, H_pad)
    w2_p = jnp.pad(w2.astype(param_dtype), ((0, H_pad - H), (0, D_pad - D)))
    b2_p = jnp.pad(b2.astype(f32), (0, D_pad - D)).reshape(1, D_pad)
    return FFNParams(gamma_p, beta_p, w1_p, b1_p, w2_p, b2_p,
                     D, H, D_pad, H_pad, tile_h)


# ----------------------------------------------------------------------------
# Apply
# ----------------------------------------------------------------------------
def feed_forward_module(x, params: FFNParams, *, tile_rows: int | None = None):
    """x: (B, T, D) -> (B, T, D), with pre-prepared FFNParams."""
    B, T, D = x.shape
    assert D == params.d
    R = B * T
    gen = _tpu_generation()

    # Row tiling: balanced tiles (avoid rounding R up by a whole tile), at
    # least 2 tiles on v7x so both TensorCores get work; bigger tiles on v6e
    # to amortize per-step overhead.
    if tile_rows is None:
        tile_rows = 512 if gen == 6 else 256
    n_r = max(1, _cdiv(R, tile_rows))
    if gen >= 7 and R >= 16:
        n_r = max(n_r, 2)
    tile_r = _round_up(_cdiv(R, n_r), 8)
    n_r = _cdiv(R, tile_r)
    R_pad = n_r * tile_r

    D_pad, H_pad, tile_h = params.d_pad, params.h_pad, params.tile_h
    n_h = H_pad // tile_h

    # Pad x in its NATIVE dtype (no f32 up-cast in the wrapper).
    x2 = jnp.pad(x.reshape(R, D), ((0, R_pad - R), (0, D_pad - D)))

    x_bytes = jnp.dtype(x.dtype).itemsize
    w_bytes = jnp.dtype(params.w1.dtype).itemsize

    # VMEM plan: x/out tiles + one w1/w2/b1 chunk, each double-buffered, plus
    # the y/acc scratches and the per-chunk h intermediate; capped per chip.
    needed = (2 * tile_r * D_pad * 2 * x_bytes                 # x + out tiles
              + 2 * tile_h * (2 * D_pad * w_bytes + 4)         # w1/w2 chunks + b1
              + 3 * 2 * D_pad * 4                              # gamma/beta/b2
              + tile_r * D_pad * (w_bytes + 4)                 # y + acc scratch
              + tile_r * tile_h * 8)                           # h intermediates
    cap = _vmem_capacity_bytes(gen)
    vmem_limit = int(min(0.9 * cap, 1.5 * needed + (16 << 20)))
    vmem_limit = min(max(vmem_limit, 32 << 20), cap)

    # Swish in bf16 only where the VPU/EUP have a native bf16 path.
    act_dtype = jnp.bfloat16 if gen >= 6 else jnp.float32

    kernel = functools.partial(ffn_kernel, d_real=D, act_dtype=act_dtype)

    # Advisory cost estimate (native-dtype activation slab).
    flops = 2 * R_pad * D_pad * H_pad * 2                      # two matmuls
    transcendentals = R_pad * H_pad + R_pad                    # sigmoid + rsqrt
    bytes_accessed = (
        2 * R_pad * D_pad * x_bytes
        + (params.w1.size + params.w2.size) * w_bytes
        + (params.gamma.size + params.beta.size
           + params.b1.size + params.b2.size) * 4)

    out2 = pl.pallas_call(
        kernel,
        out_shape=jax.ShapeDtypeStruct((R_pad, D_pad), x.dtype),
        grid_spec=pltpu.PrefetchScalarGridSpec(
            num_scalar_prefetch=0,
            grid=(n_r, n_h),
            in_specs=[
                pl.BlockSpec((tile_r, D_pad), lambda i, k: (i, 0)),   # x rows (reused over k)
                pl.BlockSpec((1, D_pad), lambda i, k: (0, 0)),        # gamma
                pl.BlockSpec((1, D_pad), lambda i, k: (0, 0)),        # beta
                pl.BlockSpec((D_pad, tile_h), lambda i, k: (0, k)),   # w1 column chunk
                pl.BlockSpec((1, tile_h), lambda i, k: (0, k)),       # b1 chunk
                pl.BlockSpec((tile_h, D_pad), lambda i, k: (k, 0)),   # w2 row chunk
                pl.BlockSpec((1, D_pad), lambda i, k: (0, 0)),        # b2
            ],
            out_specs=pl.BlockSpec((tile_r, D_pad), lambda i, k: (i, 0)),
            scratch_shapes=[
                pltpu.VMEM((tile_r, D_pad), params.w1.dtype),  # normalized LHS y
                pltpu.VMEM((tile_r, D_pad), jnp.float32),      # output accumulator
            ],
        ),
        compiler_params=pltpu.CompilerParams(
            dimension_semantics=("parallel", "arbitrary"),
            vmem_limit_bytes=vmem_limit,
        ),
        cost_estimate=pl.CostEstimate(
            flops=flops,
            transcendentals=transcendentals,
            bytes_accessed=bytes_accessed),
    )(x2, params.gamma, params.beta, params.w1, params.b1, params.w2, params.b2)

    return out2[:R, :D].reshape(B, T, D)


# ----------------------------------------------------------------------------
# Pure-JAX reference + demo
# ----------------------------------------------------------------------------
def reference_ffn(x, gamma, beta, w1, b1, w2, b2):
    xf = x.astype(jnp.float32)
    mean = jnp.mean(xf, axis=-1, keepdims=True)
    var = jnp.mean((xf - mean) ** 2, axis=-1, keepdims=True)
    y = (xf - mean) / jnp.sqrt(var + LN_EPS) * gamma + beta
    h = y @ w1 + b1
    h = h * jax.nn.sigmoid(h)
    out = h @ w2 + b2
    return out.astype(x.dtype)


if __name__ == "__main__":
    # Small shapes consistent with the module: (batch, seq, input_dims).
    B, T, D = 2, 8, 32
    expansion_factor = 4
    H = D * expansion_factor

    key = jax.random.PRNGKey(0)
    kx, kg, kb, kw1, kb1, kw2, kb2 = jax.random.split(key, 7)

    x = jax.random.normal(kx, (B, T, D), dtype=jnp.float32)

    # Deterministic synthetic parameters (not a checkpoint load).
    gamma = 1.0 + 0.1 * jax.random.normal(kg, (D,), dtype=jnp.float32)
    beta = 0.1 * jax.random.normal(kb, (D,), dtype=jnp.float32)
    w1 = jax.random.normal(kw1, (D, H), dtype=jnp.float32) / jnp.sqrt(D)
    b1 = 0.05 * jax.random.normal(kb1, (H,), dtype=jnp.float32)
    w2 = jax.random.normal(kw2, (H, D), dtype=jnp.float32) / jnp.sqrt(H)
    b2 = 0.05 * jax.random.normal(kb2, (D,), dtype=jnp.float32)

    # One-time parameter preparation (padding + bf16 cast hoisted here).
    params = prepare_ffn_params(gamma, beta, w1, b1, w2, b2)

    out = feed_forward_module(x, params)
    out = jax.block_until_ready(out)

    ref = reference_ffn(x, gamma, beta, w1, b1, w2, b2)
    assert out.shape == (B, T, D)
    # Matmul operands run in bf16 (f32 accumulation) inside the kernel, so the
    # comparison against the pure-f32 reference uses bf16-level tolerances.
    assert jnp.allclose(out, ref, atol=7.5e-2, rtol=7.5e-2), "mismatch vs reference"

    print("KERNEL_OK")
</pallas_src>

<mosaic_0001>
module attributes {stable_mosaic.version = 11 : i64} {
  func.func @ffn_kernel(%arg0: i32, %arg1: i32, %arg2: memref<16x128xf32, #tpu.memory_space<vmem>>, %arg3: memref<1x128xf32, #tpu.memory_space<vmem>>, %arg4: memref<1x128xf32, #tpu.memory_space<vmem>>, %arg5: memref<128x128xbf16, #tpu.memory_space<vmem>>, %arg6: memref<1x128xf32, #tpu.memory_space<vmem>>, %arg7: memref<128x128xbf16, #tpu.memory_space<vmem>>, %arg8: memref<1x128xf32, #tpu.memory_space<vmem>>, %arg9: memref<16x128xf32, #tpu.memory_space<vmem>>, %arg10: memref<16x128xbf16, #tpu.memory_space<vmem>>, %arg11: memref<16x128xf32, #tpu.memory_space<vmem>>) attributes {dimension_semantics = [#tpu.dimension_semantics<parallel>, #tpu.dimension_semantics<arbitrary>], iteration_bounds = array<i64: 1, 1>, scalar_prefetch = 0 : i64, scratch_operands = 2 : i64, tpu.core_type = #tpu.core_type<tc>, window_params = [{transform_indices = @transform_0, window_bounds = array<i64: 16, 128>}, {pipeline_mode = #tpu.pipeline_mode<synchronous>, transform_indices = @transform_1, window_bounds = array<i64: 1, 128>}, {pipeline_mode = #tpu.pipeline_mode<synchronous>, transform_indices = @transform_2, window_bounds = array<i64: 1, 128>}, {transform_indices = @transform_3, window_bounds = array<i64: 128, 128>}, {transform_indices = @transform_4, window_bounds = array<i64: 1, 128>}, {transform_indices = @transform_5, window_bounds = array<i64: 128, 128>}, {pipeline_mode = #tpu.pipeline_mode<synchronous>, transform_indices = @transform_6, window_bounds = array<i64: 1, 128>}, {transform_indices = @transform_7, window_bounds = array<i64: 16, 128>}]} {
    %c0_i32 = arith.constant 0 : i32
    %0 = arith.cmpi eq, %arg1, %c0_i32 : i32
    %1 = arith.extui %0 : i1 to i32
    %c0_i32_0 = arith.constant 0 : i32
    %2 = arith.cmpi ne, %1, %c0_i32_0 : i32
    scf.if %2 {
      %c0_16 = arith.constant 0 : index
      %c0_17 = arith.constant 0 : index
      %24 = vector.load %arg2[%c0_16, %c0_17] : memref<16x128xf32, #tpu.memory_space<vmem>>, vector<16x128xf32>
      %cst_18 = arith.constant dense<0.000000e+00> : vector<16xf32>
      %25 = vector.multi_reduction <add>, %24, %cst_18 [1] : vector<16x128xf32> to vector<16xf32>
      %26 = vector.shape_cast %25 : vector<16xf32> to vector<16x1xf32>
      %cst_19 = arith.constant 3.125000e-02 : f32
      %27 = vector.broadcast %cst_19 : f32 to vector<16x1xf32>
      %28 = arith.mulf %26, %27 : vector<16x1xf32>
      %29 = vector.broadcast %28 : vector<16x1xf32> to vector<16x128xf32>
      %30 = arith.subf %24, %29 : vector<16x128xf32>
      %31 = tpu.iota {dimensions = array<i32: 1>} : vector<16x128xi32>
      %c32_i32 = arith.constant 32 : i32
      %32 = vector.broadcast %c32_i32 : i32 to vector<16x128xi32>
      %33 = arith.cmpi slt, %31, %32 : vector<16x128xi32>
      %cst_20 = arith.constant 0.000000e+00 : f32
      %34 = vector.broadcast %cst_20 : f32 to vector<16x128xf32>
      %35 = arith.select %33, %30, %34 : vector<16x128xi1>, vector<16x128xf32>
      %36 = arith.mulf %35, %35 : vector<16x128xf32>
      %cst_21 = arith.constant dense<0.000000e+00> : vector<16xf32>
      %37 = vector.multi_reduction <add>, %36, %cst_21 [1] : vector<16x128xf32> to vector<16xf32>
      %38 = vector.shape_cast %37 : vector<16xf32> to vector<16x1xf32>
      %cst_22 = arith.constant 3.125000e-02 : f32
      %39 = vector.broadcast %cst_22 : f32 to vector<16x1xf32>
      %40 = arith.mulf %38, %39 : vector<16x1xf32>
      %cst_23 = arith.constant 9.99999974E-6 : f32
      %41 = vector.broadcast %cst_23 : f32 to vector<16x1xf32>
      %42 = arith.addf %40, %41 : vector<16x1xf32>
      %43 = math.rsqrt %42 : vector<16x1xf32>
      %44 = vector.broadcast %43 : vector<16x1xf32> to vector<16x128xf32>
      %45 = arith.mulf %35, %44 : vector<16x128xf32>
      %c0_24 = arith.constant 0 : index
      %c0_25 = arith.constant 0 : index
      %46 = vector.load %arg3[%c0_24, %c0_25] : memref<1x128xf32, #tpu.memory_space<vmem>>, vector<1x128xf32>
      %47 = vector.broadcast %46 : vector<1x128xf32> to vector<16x128xf32>
      %48 = arith.mulf %45, %47 : vector<16x128xf32>
      %c0_26 = arith.constant 0 : index
      %c0_27 = arith.constant 0 : index
      %49 = vector.load %arg4[%c0_26, %c0_27] : memref<1x128xf32, #tpu.memory_space<vmem>>, vector<1x128xf32>
      %50 = vector.broadcast %49 : vector<1x128xf32> to vector<16x128xf32>
      %51 = arith.addf %48, %50 : vector<16x128xf32>
      %52 = arith.truncf %51 : vector<16x128xf32> to vector<16x128xbf16>
      %c0_28 = arith.constant 0 : index
      %c0_29 = arith.constant 0 : index
      %53 = vector.load %arg10[%c0_28, %c0_29] : memref<16x128xbf16, #tpu.memory_space<vmem>>, vector<16x128xbf16>
      tpu.vector_store %arg10[%c0_28, %c0_29], %52 {strides = array<i32>} : memref<16x128xbf16, #tpu.memory_space<vmem>>, vector<16x128xbf16>,
      %cst_30 = arith.constant 0.000000e+00 : f32
      %54 = vector.broadcast %cst_30 : f32 to vector<16x128xf32>
      %c0_31 = arith.constant 0 : index
      %c0_32 = arith.constant 0 : index
      %55 = vector.load %arg11[%c0_31, %c0_32] : memref<16x128xf32, #tpu.memory_space<vmem>>, vector<16x128xf32>
      tpu.vector_store %arg11[%c0_31, %c0_32], %54 {strides = array<i32>} : memref<16x128xf32, #tpu.memory_space<vmem>>, vector<16x128xf32>,
    } else {
    }
    %c0 = arith.constant 0 : index
    %c0_1 = arith.constant 0 : index
    %3 = vector.load %arg10[%c0, %c0_1] : memref<16x128xbf16, #tpu.memory_space<vmem>>, vector<16x128xbf16>
    %c0_2 = arith.constant 0 : index
    %c0_3 = arith.constant 0 : index
    %4 = vector.load %arg5[%c0_2, %c0_3] : memref<128x128xbf16, #tpu.memory_space<vmem>>, vector<128x128xbf16>
    %cst = arith.constant dense<0.000000e+00> : vector<16x128xf32>
    %5 = tpu.matmul %3, %4, %cst {dimension_numbers = #tpu.dot_dimension_numbers<[1], [0], [0], [1], [0, 0, 1, 1], [], []>} : vector<16x128xbf16>, vector<128x128xbf16>, vector<16x128xf32> -> vector<16x128xf32>
    %c0_4 = arith.constant 0 : index
    %c0_5 = arith.constant 0 : index
    %6 = vector.load %arg6[%c0_4, %c0_5] : memref<1x128xf32, #tpu.memory_space<vmem>>, vector<1x128xf32>
    %7 = vector.broadcast %6 : vector<1x128xf32> to vector<16x128xf32>
    %8 = arith.addf %5, %7 : vector<16x128xf32>
    %9 = arith.negf %8 : vector<16x128xf32>
    %10 = math.exp %9 : vector<16x128xf32>
    %cst_6 = arith.constant 1.000000e+00 : f32
    %11 = vector.broadcast %cst_6 : f32 to vector<16x128xf32>
    %12 = arith.addf %11, %10 : vector<16x128xf32>
    %13 = arith.divf %11, %12 : vector<16x128xf32>
    %14 = arith.mulf %8, %13 : vector<16x128xf32>
    %c0_7 = arith.constant 0 : index
    %c0_8 = arith.constant 0 : index
    %15 = vector.load %arg11[%c0_7, %c0_8] : memref<16x128xf32, #tpu.memory_space<vmem>>, vector<16x128xf32>
    %16 = arith.truncf %14 : vector<16x128xf32> to vector<16x128xbf16>
    %c0_9 = arith.constant 0 : index
    %c0_10 = arith.constant 0 : index
    %17 = vector.load %arg7[%c0_9, %c0_10] : memref<128x128xbf16, #tpu.memory_space<vmem>>, vector<128x128xbf16>
    %cst_11 = arith.constant dense<0.000000e+00> : vector<16x128xf32>
    %18 = tpu.matmul %16, %17, %cst_11 {dimension_numbers = #tpu.dot_dimension_numbers<[1], [0], [0], [1], [0, 0, 1, 1], [], []>} : vector<16x128xbf16>, vector<128x128xbf16>, vector<16x128xf32> -> vector<16x128xf32>
    %19 = arith.addf %15, %18 : vector<16x128xf32>
    %c0_12 = arith.constant 0 : index
    %c0_13 = arith.constant 0 : index
    %20 = vector.load %arg11[%c0_12, %c0_13] : memref<16x128xf32, #tpu.memory_space<vmem>>, vector<16x128xf32>
    tpu.vector_store %arg11[%c0_12, %c0_13], %19 {strides = array<i32>} : memref<16x128xf32, #tpu.memory_space<vmem>>, vector<16x128xf32>,
    %c0_i32_14 = arith.constant 0 : i32
    %21 = arith.cmpi eq, %arg1, %c0_i32_14 : i32
    %22 = arith.extui %21 : i1 to i32
    %c0_i32_15 = arith.constant 0 : i32
    %23 = arith.cmpi ne, %22, %c0_i32_15 : i32
    scf.if %23 {
      %c0_16 = arith.constant 0 : index
      %c0_17 = arith.constant 0 : index
      %24 = vector.load %arg11[%c0_16, %c0_17] : memref<16x128xf32, #tpu.memory_space<vmem>>, vector<16x128xf32>
      %c0_18 = arith.constant 0 : index
      %c0_19 = arith.constant 0 : index
      %25 = vector.load %arg8[%c0_18, %c0_19] : memref<1x128xf32, #tpu.memory_space<vmem>>, vector<1x128xf32>
      %26 = vector.broadcast %25 : vector<1x128xf32> to vector<16x128xf32>
      %27 = arith.addf %24, %26 : vector<16x128xf32>
      %c0_20 = arith.constant 0 : index
      %c0_21 = arith.constant 0 : index
      %28 = vector.load %arg9[%c0_20, %c0_21] : memref<16x128xf32, #tpu.memory_space<vmem>>, vector<16x128xf32>
      tpu.vector_store %arg9[%c0_20, %c0_21], %27 {strides = array<i32>} : memref<16x128xf32, #tpu.memory_space<vmem>>, vector<16x128xf32>,
    } else {
    }
    return
  }
  func.func @transform_0(%arg0: i32, %arg1: i32) -> (i32, i32) {
    %c0_i32 = arith.constant 0 : i32
    %c0_i32_0 = arith.constant 0 : i32
    return %arg0, %c0_i32 : i32, i32
  }
  func.func @transform_1(%arg0: i32, %arg1: i32) -> (i32, i32) {
    %c0_i32 = arith.constant 0 : i32
    %c0_i32_0 = arith.constant 0 : i32
    %c0_i32_1 = arith.constant 0 : i32
    return %c0_i32, %c0_i32_0 : i32, i32
  }
  func.func @transform_2(%arg0: i32, %arg1: i32) -> (i32, i32) {
    %c0_i32 = arith.constant 0 : i32
    %c0_i32_0 = arith.constant 0 : i32
    %c0_i32_1 = arith.constant 0 : i32
    return %c0_i32, %c0_i32_0 : i32, i32
  }
  func.func @transform_3(%arg0: i32, %arg1: i32) -> (i32, i32) {
    %c0_i32 = arith.constant 0 : i32
    %c0_i32_0 = arith.constant 0 : i32
    return %c0_i32, %arg1 : i32, i32
  }
  func.func @transform_4(%arg0: i32, %arg1: i32) -> (i32, i32) {
    %c0_i32 = arith.constant 0 : i32
    %c0_i32_0 = arith.constant 0 : i32
    return %c0_i32, %arg1 : i32, i32
  }
  func.func @transform_5(%arg0: i32, %arg1: i32) -> (i32, i32) {
    %c0_i32 = arith.constant 0 : i32
    %c0_i32_0 = arith.constant 0 : i32
    return %arg1, %c0_i32 : i32, i32
  }
  func.func @transform_6(%arg0: i32, %arg1: i32) -> (i32, i32) {
    %c0_i32 = arith.constant 0 : i32
    %c0_i32_0 = arith.constant 0 : i32
    %c0_i32_1 = arith.constant 0 : i32
    return %c0_i32, %c0_i32_0 : i32, i32
  }
  func.func @transform_7(%arg0: i32, %arg1: i32) -> (i32, i32) {
    %c0_i32 = arith.constant 0 : i32
    %c0_i32_0 = arith.constant 0 : i32
    return %arg0, %c0_i32 : i32, i32
  }
}

</mosaic_0001>

<bundles_post_ra>
// kernel: tpu_custom_call.1
= control target key start
LH: loop header
LB: loop body
LE: loop exit
PB: predicated region body
PF: predicated region fallthrough
CT: control target
= control target key end

     0   :  { %12 = vsyncpa [#allocation5], 0  ;;  %s749_s0 = inlined_call_operand.hbm [shape: f32[16,128], index: 0, kind: input, shape index: {}]   ;;  %s750_s1 = inlined_call_operand.vmem [shape: f32[1,128], index: 1, kind: input, shape index: {}]   ;;  %s751_s2 = inlined_call_operand.vmem [shape: f32[1,128], index: 2, kind: input, shape index: {}]   ;;  %s752_s3 = inlined_call_operand.hbm [shape: bf16[128,128], index: 3, kind: input, shape index: {}]   ;;  %s753_s4 = inlined_call_operand.vmem [shape: f32[1,128], index: 4, kind: input, shape index: {}]   ;;  %s754_s5 = inlined_call_operand.hbm [shape: bf16[128,128], index: 5, kind: input, shape index: {}]   ;;  %s755_s6 = inlined_call_operand.vmem [shape: f32[1,128], index: 6, kind: input, shape index: {}]   ;;  %s756_s7 = inlined_call_operand.hbm [shape: f32[16,128], index: 7, kind: output, shape index: {}]  }
   0x1   :  { %13 = vsyncpa [#allocation8], 0 }
   0x2   :  { %14 = vsyncpa [#allocation6], 0  ;;  %s609_s24 = smov [#allocation7]   ;;  %s515_s28 = scalar_lea.hbm %s752_s3, 1024 }
   0x3   :  { %s36_s25 = sshll.u32 %s609_s24, 4  ;;  %p516_p0 = scmp.ne.s32.totalorder %s752_s3, %s515_s28  ;;  %s37_s25 = int_to_ptr.vmem [resolvable:$true] %s36_s25 }
   0x4   :  { %p519_p1 = scmp.lt.u32.totalorder %s515_s28, %s752_s3 }
   0x6   :  { %p521_p2 = pnand %p519_p1, %p516_p0 }
   0x8   :  { %524 = shalt.err (!%p521_p2)
}
   0x9   :  { %s525_s10 = scalar_lea.vmem %s37_s25, 1024  ;;  %p530_p4 = scmp.lt.s32.totalorder %s37_s25, %s37_s25 }
   0xa   :  { %p526_p3 = scmp.ne.s32.totalorder %s37_s25, %s525_s10  ;;  %p531_p5 = scmp.lt.s32.totalorder %s525_s10, %s525_s10 }
   0xc   :  { %p532_p6 = por %p531_p5, %p530_p4 }
   0xe   :  { %p533_p7 = pnand %p532_p6, %p526_p3 }
  0x10   :  { %536 = shalt.err (!%p533_p7)
}
  0x11   :  { %s610_s11 = smov 64   ;;  %s611_s12 = smov 4  }
  0x12   :  { %42 = dma.hbm_to_vmem [thread:$0]  %s752_s3, 1024, %s37_s25, [#allocation8], %s610_s11, %s610_s11, %s611_s12  }
  0x13   :  { %s612_s15 = smov [#allocation4]   ;;  %s537_s19 = scalar_lea.hbm %s749_s0, 256 }
  0x14   :  { %s20_s16 = sshll.u32 %s612_s15, 4  ;;  %p538_p8 = scmp.ne.s32.totalorder %s749_s0, %s537_s19  ;;  %s21_s16 = int_to_ptr.vmem [resolvable:$true] %s20_s16 }
  0x15   :  { %p541_p9 = scmp.lt.u32.totalorder %s537_s19, %s749_s0 }
  0x17   :  { %p543_p10 = pnand %p541_p9, %p538_p8 }
  0x19   :  { %546 = shalt.err (!%p543_p10)
}
  0x1a   :  { %s547_s24 = scalar_lea.vmem %s21_s16, 256  ;;  %p552_p12 = scmp.lt.s32.totalorder %s21_s16, %s21_s16 }
  0x1b   :  { %p548_p11 = scmp.ne.s32.totalorder %s21_s16, %s547_s24  ;;  %p553_p13 = scmp.lt.s32.totalorder %s547_s24, %s547_s24 }
  0x1d   :  { %p554_p0 = por %p553_p13, %p552_p12 }
  0x1f   :  { %p555_p1 = pnand %p554_p0, %p548_p11 }
  0x21   :  { %558 = shalt.err (!%p555_p1)
}
  0x22   :  { %s613_s3 = smov 128   ;;  %s614_s25 = smov 8  }
  0x23   :  { %26 = dma.hbm_to_vmem [thread:$0]  %s749_s0, 256, %s21_s16, [#allocation5], %s613_s3, %s613_s3, %s614_s25  }
  0x24   :  { %s615_s28 = smov [#allocation9]   ;;  %s559_s9 = scalar_lea.hbm %s754_s5, 1024 }
  0x25   :  { %s50_s29 = sshll.u32 %s615_s28, 4  ;;  %p560_p2 = scmp.ne.s32.totalorder %s754_s5, %s559_s9  ;;  %s51_s29 = int_to_ptr.vmem [resolvable:$true] %s50_s29 }
  0x26   :  { %p563_p3 = scmp.lt.u32.totalorder %s559_s9, %s754_s5 }
  0x28   :  { %p565_p4 = pnand %p563_p3, %p560_p2 }
  0x2a   :  { %568 = shalt.err (!%p565_p4)
}
  0x2b   :  { %s569_s17 = scalar_lea.vmem %s51_s29, 1024  ;;  %p574_p6 = scmp.lt.s32.totalorder %s51_s29, %s51_s29 }
  0x2c   :  { %p570_p5 = scmp.ne.s32.totalorder %s51_s29, %s569_s17  ;;  %p575_p7 = scmp.lt.s32.totalorder %s569_s17, %s569_s17 }
  0x2e   :  { %p576_p8 = por %p575_p7, %p574_p6 }
  0x30   :  { %p577_p9 = pnand %p576_p8, %p570_p5 }
  0x32   :  { %580 = shalt.err (!%p577_p9)
}
  0x33   :  { %56 = dma.hbm_to_vmem [thread:$0]  %s754_s5, 1024, %s51_s29, [#allocation8], %s610_s11, %s610_s11, %s611_s12  }
  0x34   :  { %603 = dma.done.wait [#allocation5], 256  }
  0x35   :  { %604 = vsyncadd [#allocation5], 4294967040 }
  0x36   :  { %605 = dma.done.wait [#allocation8], 2048  }
  0x37   :  { %606 = vsyncadd [#allocation8], 4294965248  ;;  %v73_v0 = vld [vmem:[#allocation4] sm:$0xff]  ;;  %v74_v1 = vld [vmem:[#allocation4 + $0x8] sm:$0xff]  ;;  %v616_v3 = vmov 0.0   ;;  %v83_v4 = vlaneseq  ;;  %vm617_vm1 = vmmov 0  }
  0x38   :  { %75 = vadd.xlane.f32.xlu0 %v73_v0  ;;  %v487_v2 = vld [vmem:[#allocation7] sm:$0xff]   ;;  %437 = vmatprep.subr.bf16.mxu0 %v616_v3  ;;  %v488_v16 = vld [vmem:[#allocation7 + $0x8] sm:$0xff]   ;;  %v489_v17 = vld [vmem:[#allocation7 + $0x10] sm:$0xff]   ;;  %s618_s20 = smov [#allocation10]  }
  0x39   :  { %457 = vmatprep.subr.bf16.mxu1 %v616_v3  ;;  %438 = vmatpush3.bf16.msra.mxu0 %v487_v2  ;;  %v84_v5 = vand.u32 127, %v83_v4  ;;  %v490_v18 = vld [vmem:[#allocation7 + $0x18] sm:$0xff]   ;;  %v491_v19 = vld [vmem:[#allocation7 + $0x20] sm:$0xff]   ;;  %v492_v20 = vld [vmem:[#allocation7 + $0x28] sm:$0xff]   ;;  %s384_s21 = sshll.u32 %s618_s20, 4  ;;  %s385_s21 = int_to_ptr.vmem [resolvable:$true] %s384_s21 }
  0x3a   :  { %439 = vmatprep.subr.bf16.mxu0 %v616_v3  ;;  %453 = vmatprep.mubr.msk.bf16.mxu0 %vm617_vm1, %v616_v3  ;;  %v493_v21 = vld [vmem:[#allocation7 + $0x30] sm:$0xff]   ;;  %v494_v22 = vld [vmem:[#allocation7 + $0x38] sm:$0xff]   ;;  %v495_v40 = vld [vmem:[#allocation9] sm:$0xff]   ;;  %s581_s22 = scalar_lea.vmem %s385_s21, 256  ;;  %p586_p11 = scmp.lt.s32.totalorder %s385_s21, %s385_s21 }
  0x3b   :  { %vm85_vm0 = vcmp.lt.s32.totalorder %v84_v5, 32  ;;  %473 = vmatprep.mubr.msk.bf16.mxu1 %vm617_vm1, %v616_v3  ;;  %v397_v31 = vld [vmem:[%s750_s1] ss:$0 sm:$0xff]  ;;  %458 = vmatpush3.bf16.msra.mxu1 %v495_v40  ;;  %v496_v41 = vld [vmem:[#allocation9 + $0x8] sm:$0xff]   ;;  %v498_v43 = vld [vmem:[#allocation9 + $0x18] sm:$0xff]   ;;  %p582_p10 = scmp.ne.s32.totalorder %s385_s21, %s581_s22  ;;  %p587_p12 = scmp.lt.s32.totalorder %s581_s22, %s581_s22 }
  0x3c   :  { %77 = vadd.xlane.f32.xlu0 %v74_v1  ;;  %v398_v35 = vld [vmem:[%s751_s2] ss:$0 sm:$0xff]  ;;  %459 = vmatprep.subr.bf16.mxu1 %v616_v3  ;;  %v499_v44 = vld [vmem:[#allocation9 + $0x20] sm:$0xff]   ;;  %v500_v45 = vld [vmem:[#allocation9 + $0x28] sm:$0xff]  }
  0x3d   :  { %440 = vmatpush3.bf16.msra.mxu0 %v488_v16  ;;  %v497_v42 = vld [vmem:[#allocation9 + $0x10] sm:$0xff]   ;;  %v502_v47 = vld [vmem:[#allocation9 + $0x38] sm:$0xff]   ;;  %p588_p13 = por %p587_p12, %p586_p11 }
  0x3e   :  { %441 = vmatprep.subr.bf16.mxu0 %v616_v3  ;;  %v501_v46 = vld [vmem:[#allocation9 + $0x30] sm:$0xff]  }
  0x3f   :  { %460 = vmatpush3.bf16.msra.mxu1 %v496_v41  ;;  %v399_v48 = vld [vmem:[%s753_s4] ss:$0 sm:$0xff]  ;;  %p589_p0 = pnand %p588_p13, %p582_p10 }
  0x40   :  { %461 = vmatprep.subr.bf16.mxu1 %v616_v3  ;;  %v418_v2 = vld [vmem:[%s755_s6] ss:$0 sm:$0xff] }
  0x41   :  { %442 = vmatpush3.bf16.msra.mxu0 %v489_v17 }
  0x42   :  { %443 = vmatprep.subr.bf16.mxu0 %v616_v3 }
  0x43   :  { %462 = vmatpush3.bf16.msra.mxu1 %v497_v42 }
  0x44   :  { %463 = vmatprep.subr.bf16.mxu1 %v616_v3 }
  0x45   :  { %444 = vmatpush3.bf16.msra.mxu0 %v490_v18 }
  0x46   :  { %445 = vmatprep.subr.bf16.mxu0 %v616_v3 }
  0x47   :  { %464 = vmatpush3.bf16.msra.mxu1 %v498_v43 }
  0x48   :  { %465 = vmatprep.subr.bf16.mxu1 %v616_v3 }
  0x49   :  { %446 = vmatpush3.bf16.msra.mxu0 %v491_v19 }
  0x4a   :  { %447 = vmatprep.subr.bf16.mxu0 %v616_v3 }
  0x4b   :  { %466 = vmatpush3.bf16.msra.mxu1 %v499_v44 }
  0x4c   :  { %467 = vmatprep.subr.bf16.mxu1 %v616_v3 }
  0x4d   :  { %448 = vmatpush3.bf16.msra.mxu0 %v492_v20 }
  0x4e   :  { %449 = vmatprep.subr.bf16.mxu0 %v616_v3 }
  0x4f   :  { %468 = vmatpush3.bf16.msra.mxu1 %v500_v45 }
  0x50   :  { %469 = vmatprep.subr.bf16.mxu1 %v616_v3 }
  0x51   :  { %450 = vmatpush3.bf16.msra.mxu0 %v493_v21 }
  0x52   :  { %451 = vmatprep.subr.bf16.mxu0 %v616_v3 }
  0x53   :  { %470 = vmatpush3.bf16.msra.mxu1 %v501_v46 }
  0x54   :  { %471 = vmatprep.subr.bf16.mxu1 %v616_v3 }
  0x55   :  { %452 = vmatpush3.bf16.msra.mxu0 %v494_v22 }
  0x57   :  { %472 = vmatpush3.bf16.msra.mxu1 %v502_v47 }
  0xc5   :  { %v76_v6 = vpop.xlane.xlu0 %75 }
  0xc6   :  { %v79_v7 = vmul.f32 0.03125, %v76_v6 }
  0xc8   :  { %v81_v8 = vsub.f32 %v73_v0, %v79_v7 }
  0xc9   :  { %v78_v9 = vpop.xlane.xlu0 %77 }
  0xca   :  { %v80_v10 = vmul.f32 0.03125, %v78_v9  ;;  %v86_v11 = vsel %vm85_vm0, %v81_v8, 0.0 }
  0xcb   :  { %v88_v12 = vmul.f32 %v86_v11, %v86_v11 }
  0xcc   :  { %v82_v13 = vsub.f32 %v74_v1, %v80_v10 }
  0xcd   :  { %90 = vadd.xlane.f32.xlu1 %v88_v12 }
  0xce   :  { %v87_v14 = vsel %vm85_vm0, %v82_v13, 0.0 }
  0xcf   :  { %v89_v15 = vmul.f32 %v87_v14, %v87_v14 }
  0xd1   :  { %92 = vadd.xlane.f32.xlu1 %v89_v15 }
 0x15a   :  { %v91_v23 = vpop.xlane.xlu1 %90 }
 0x15b   :  { %v94_v24 = vmul.f32 0.03125, %v91_v23 }
 0x15d   :  { %v96_v25 = vadd.f32 1e-05, %v94_v24 }
 0x15e   :  { %v93_v26 = vpop.xlane.xlu1 %92 }
 0x15f   :  { %503 = vrsqrt.f32 %v96_v25  ;;  %v95_v27 = vmul.f32 0.03125, %v93_v26 }
 0x161   :  { %v97_v28 = vadd.f32 1e-05, %v95_v27 }
 0x163   :  { %505 = vrsqrt.f32 %v97_v28 }
 0x169   :  { %v504_v29 = vpop.eup %503 }
 0x16a   :  { %v100_v30 = vmul.f32 %v504_v29, %v86_v11 }
 0x16c   :  { %v109_v34 = vmul.f32 %v397_v31, %v100_v30 }
 0x16d   :  { %v506_v32 = vpop.eup %505 }
 0x16e   :  { %v101_v33 = vmul.f32 %v506_v32, %v87_v14  ;;  %v118_v37 = vadd.f32 %v398_v35, %v109_v34 }
 0x170   :  { %v110_v36 = vmul.f32 %v397_v31, %v101_v33 }
 0x172   :  { %v119_v38 = vadd.f32 %v398_v35, %v110_v36 }
 0x174   :  { %v120_v39 = vpack.c.bf16 %v119_v38, %v118_v37 }
 0x176   :  { %454 = vmatmul.mubr.bf16.vlgmr.msra.gmra.mrb[0].mxu0 %v120_v39 }
 0x249   :  { %v230_v49 = vpop.f32.mrb[0].mxu0 }
 0x24a   :  { %v231_v50 = vadd.f32 %v399_v48, %v230_v49  ;;  %v455_v51 = vpop.f32.mrb[1].mxu0 }
 0x24b   :  { %v233_v52 = vpop.f32.mrb[2].mxu0 }
 0x24c   :  { %v408_v53 = vmul.f32 -1.442695, %v231_v50  ;;  %v234_v54 = vadd.f32 %v399_v48, %v233_v52  ;;  %v456_v55 = vpop.f32.mrb[3].mxu0 }
 0x24e   :  { %507 = vpow2.f32 %v408_v53  ;;  %v409_v56 = vmul.f32 -1.442695, %v234_v54 }
 0x250   :  { %509 = vpow2.f32 %v409_v56 }
 0x258   :  { %v508_v57 = vpop.eup %507 }
 0x259   :  { %v243_v58 = vadd.f32 1.0, %v508_v57 }
 0x25a   :  { %v510_v59 = vpop.eup %509 }
 0x25b   :  { %511 = vrcp.f32 %v243_v58  ;;  %v244_v60 = vadd.f32 1.0, %v510_v59 }
 0x25d   :  { %513 = vrcp.f32 %v244_v60 }
 0x265   :  { %v512_v61 = vpop.eup %511 }
 0x266   :  { %v249_v63 = vmul.f32 %v512_v61, %v231_v50 }
 0x267   :  { %v514_v62 = vpop.eup %513 }
 0x268   :  { %v250_v0 = vmul.f32 %v514_v62, %v234_v54 }
 0x26a   :  { %v253_v1 = vpack.c.bf16 %v250_v0, %v249_v63 }
 0x26c   :  { %474 = vmatmul.mubr.bf16.vlgmr.msra.gmra.mrb[0].mxu1 %v253_v1 }
 0x33f   :  { %v352_v3 = vpop.f32.mrb[0].mxu1 }
 0x340   :  { %v375_v4 = vadd.f32 %v418_v2, %v352_v3  ;;  %v475_v5 = vpop.f32.mrb[1].mxu1 }
 0x341   :  { %v355_v6 = vpop.f32.mrb[2].mxu1 }
 0x342   :  { %377 = vst [vmem:[#allocation10] sm:$0xff] %v375_v4  ;;  %v376_v7 = vadd.f32 %v418_v2, %v355_v6  ;;  %v476_v8 = vpop.f32.mrb[3].mxu1 }
 0x344   :  { %378 = vst [vmem:[#allocation10 + $0x8] sm:$0xff] %v376_v7 }
 0x345   :  { %592 = shalt.err (!%p589_p0)
}
 0x346   :  { %s593_s24 = scalar_lea.hbm %s756_s7, 256 }
 0x347   :  { %p594_p1 = scmp.ne.s32.totalorder %s756_s7, %s593_s24  ;;  %p597_p2 = scmp.lt.u32.totalorder %s593_s24, %s756_s7 }
 0x349   :  { %p599_p3 = pnand %p597_p2, %p594_p1 }
 0x34b   :  { %602 = shalt.err (!%p599_p3)
}
 0x34c   :  { %390 = dma.vmem_to_hbm [thread:$0]  %s385_s21, 256, %s756_s7, [#allocation6], %s613_s3, %s613_s3, %s614_s25  }
 0x34d   :  { %607 = dma.done.wait [#allocation6], 256  }
 0x34e   :  { %608 = vsyncadd [#allocation6], 4294967040 }
 0x34f   :  { %394 = vsyncpa [#allocation5], 1 }
 0x350   :  { %395 = vsyncpa [#allocation8], 1 }
 0x351   :  { %396 = vsyncpa [#allocation6], 1 }

</bundles_post_ra>
